<compile_context>
chip_gen: v5e
topology: v5e:2x2
jax: 0.10.0
libtpu: 0.0.40
codegen_flags: <defaults>
</compile_context>

<pallas_src>
import functools

import jax
import jax.numpy as jnp
from jax.experimental import pallas as pl
from jax.experimental.pallas import tpu as pltpu


def _cdiv(a, b):
    return (a + b - 1) // b


def _round_up(a, b):
    return _cdiv(a, b) * b


def _conv_tap_matmuls(slab, w_ref, b_ref, o_ref, *, ksize, tile_l):
    """slab: (C_in, >= tile_l + ksize - 1); w_ref: (K, C_out, C_in); o_ref: (1, C_out, TL)."""
    acc = jnp.dot(w_ref[0], slab[:, :tile_l], preferred_element_type=jnp.float32)
    for k in range(1, ksize):
        acc = acc + jnp.dot(
            w_ref[k], slab[:, k:k + tile_l], preferred_element_type=jnp.float32
        )
    acc = acc + b_ref[...]                       # (C_out, 1) broadcast over lanes
    o_ref[0] = acc.astype(o_ref.dtype)


def _kernel_resident(x_ref, w_ref, b_ref, o_ref, *, ksize, tile_l):
    """x_ref: (1, C_in, L_tot) -- whole padded row of batch n, resident across j."""
    start = pl.multiple_of(pl.program_id(1) * tile_l, 128)
    width = 2 * tile_l if ksize > 1 else tile_l
    slab = x_ref[0, :, pl.ds(start, width)]      # (C_in, width), lane-aligned start
    _conv_tap_matmuls(slab, w_ref, b_ref, o_ref, ksize=ksize, tile_l=tile_l)


def _kernel_halo(xa_ref, xb_ref, w_ref, b_ref, o_ref, *, ksize, tile_l):
    """xa_ref: (1, C_in, TL) tile j; xb_ref: (1, C_in, TL) tile j+1 (halo)."""
    slab = jnp.concatenate([xa_ref[0], xb_ref[0]], axis=-1)   # (C_in, 2*TL)
    _conv_tap_matmuls(slab, w_ref, b_ref, o_ref, ksize=ksize, tile_l=tile_l)


def _kernel_tile(x_ref, w_ref, b_ref, o_ref, *, tile_l):
    """kernel_size == 1: no halo needed."""
    _conv_tap_matmuls(x_ref[0], w_ref, b_ref, o_ref, ksize=1, tile_l=tile_l)


# Budget for keeping a whole (double-buffered) padded row of x resident in VMEM.
# Chosen so the total stays well under v7x's 64 MiB physical / 48 MiB limit below.
_RESIDENT_X_BYTES_MAX = 24 * 1024 * 1024


@functools.partial(jax.jit, static_argnames=("stride", "padding", "block_l"))
def weight_norm_conv1d(x, v, g, bias, *, stride=1, padding=0, block_l=1024):
    """x: (N, C_in, L) NCL like torch; returns (N, C_out, L_out) NCL."""
    assert stride == 1, "only stride=1 implemented"
    # TODO(synk): dilation != 1 and groups != 1 are not implemented.
    n, c_in, l = x.shape
    c_out, c_in2, ksize = v.shape
    assert c_in == c_in2

    l_p = l + 2 * padding
    l_out = l_p - ksize + 1
    assert l_out >= 1

    # Tile length along L: multiple of 128, no larger than needed.
    tl = max(128, min(_round_up(block_l, 128), _round_up(l_out, 128)))
    assert ksize <= tl, "kernel_size must not exceed the L tile length"
    j_tiles = _cdiv(l_out, tl)
    halo = 1 if ksize > 1 else 0
    l_tot = (j_tiles + halo) * tl                 # extra tile = halo for the last tile
    itemsize = jnp.dtype(x.dtype).itemsize

    # --- weight norm hoisted out of the kernel (computed once with rsqrt) ---
    # If a filter v[o] is all zeros this yields inf/nan, matching PyTorch behaviour.
    sq = jnp.sum(jnp.square(v.astype(jnp.float32)), axis=(1, 2))          # (C_out,)
    scale = g.astype(jnp.float32) * jax.lax.rsqrt(sq)                     # (C_out,)
    w = v.astype(jnp.float32) * scale[:, None, None]                      # (C_out, C_in, K)
    w_taps = jnp.transpose(w, (2, 0, 1)).astype(x.dtype)                  # (K, C_out, C_in)
    b2 = bias.reshape(c_out, 1).astype(jnp.float32)

    # --- x stays NCL: only conv padding + right zero-fill up to L_tot (no relayout) ---
    x_pad = jnp.pad(x, ((0, 0), (0, 0), (padding, l_tot - l - padding)))  # (N, C_in, L_tot)

    w_spec = pl.BlockSpec((ksize, c_out, c_in), lambda i, j: (0, 0, 0))
    b_spec = pl.BlockSpec((c_out, 1), lambda i, j: (0, 0))
    out_spec = pl.BlockSpec((1, c_out, tl), lambda i, j: (i, 0, j))
    tile_spec = pl.BlockSpec((1, c_in, tl), lambda i, j: (i, 0, j))

    row_bytes = c_in * l_tot * itemsize
    resident = halo == 1 and 2 * row_bytes <= _RESIDENT_X_BYTES_MAX

    if halo == 0:
        # kernel_size == 1: plain per-tile spec, bounded VMEM, 1x x traffic.
        kernel = functools.partial(_kernel_tile, tile_l=tl)
        operands = (x_pad, w_taps, b2)
        in_specs = [tile_spec, w_spec, b_spec]
        x_vmem = 2 * c_in * tl * itemsize
        dims = ("parallel", "parallel")
    elif resident:
        # Whole padded row resident across the j axis: 1x x HBM traffic.
        kernel = functools.partial(_kernel_resident, ksize=ksize, tile_l=tl)
        operands = (x_pad, w_taps, b2)
        in_specs = [pl.BlockSpec((1, c_in, l_tot), lambda i, j: (i, 0, 0)),
                    w_spec, b_spec]
        x_vmem = 2 * row_bytes
        # Keep j "arbitrary": splitting j across megacore TCs would duplicate the
        # whole-row DMA per core; the batch axis carries the core parallelism.
        dims = ("parallel", "arbitrary")
    else:
        # Long rows (v7x-safe): per-tile halo specs, VMEM independent of L.
        kernel = functools.partial(_kernel_halo, ksize=ksize, tile_l=tl)
        halo_spec = pl.BlockSpec((1, c_in, tl), lambda i, j: (i, 0, j + 1))
        operands = (x_pad, x_pad, w_taps, b2)
        in_specs = [tile_spec, halo_spec, w_spec, b_spec]
        x_vmem = 2 * 2 * c_in * tl * itemsize
        dims = ("parallel", "parallel")

    out_vmem = 2 * c_out * tl * itemsize
    w_vmem = 2 * (ksize * c_out * c_in * itemsize + c_out * 4)
    need = x_vmem + out_vmem + w_vmem
    # Floor 32 MiB (compiler headroom), cap 48 MiB (safe on v7x's 64 MiB VMEM).
    # TODO(synk): raise the cap toward 64-100 MiB when targeting v5e/v6e only.
    vmem_limit = int(min(48 * 1024 * 1024, max(32 * 1024 * 1024, need + 8 * 1024 * 1024)))

    out = pl.pallas_call(
        kernel,
        out_shape=jax.ShapeDtypeStruct((n, c_out, j_tiles * tl), x.dtype),
        grid=(n, j_tiles),
        in_specs=in_specs,
        out_specs=out_spec,
        compiler_params=pltpu.CompilerParams(
            dimension_semantics=dims,
            vmem_limit_bytes=vmem_limit,
        ),
    )(*operands)

    if j_tiles * tl != l_out:
        # TODO(synk): callers that can consume a padded-L output should skip this slice.
        out = out[:, :, :l_out]
    return out


def _reference(x, v, g, bias, *, padding=0):
    """Pure-JAX reference (weight_norm + conv1d) for correctness checking."""
    norm = jnp.sqrt(jnp.sum(v * v, axis=(1, 2), keepdims=True))  # (C_out,1,1)
    w = v * (g.reshape(-1, 1, 1) / norm)
    y = jax.lax.conv_general_dilated(
        x, w, window_strides=(1,), padding=[(padding, padding)],
        dimension_numbers=("NCH", "OIH", "NCH"),
    )
    return y + bias.reshape(1, -1, 1)


if __name__ == "__main__":
    # Module config (synthetic, deterministic): Conv1d(4, 8, kernel_size=3, padding=1)
    N, C_IN, L = 2, 4, 16
    C_OUT, K, PAD = 8, 3, 1

    key = jax.random.PRNGKey(0)
    kx, kv, kg, kb = jax.random.split(key, 4)
    x = jax.random.normal(kx, (N, C_IN, L), dtype=jnp.float32)
    v = jax.random.normal(kv, (C_OUT, C_IN, K), dtype=jnp.float32)
    g = jax.random.uniform(kg, (C_OUT,), dtype=jnp.float32, minval=0.5, maxval=1.5)
    bias = jax.random.normal(kb, (C_OUT,), dtype=jnp.float32) * 0.1

    y = weight_norm_conv1d(x, v, g, bias, padding=PAD)
    y = jax.block_until_ready(y)

    y_ref = _reference(x, v, g, bias, padding=PAD)
    assert y.shape == (N, C_OUT, L), y.shape
    assert jnp.allclose(y, y_ref, atol=1e-4, rtol=1e-4), "mismatch vs reference"

    print("KERNEL_OK")
</pallas_src>

<mosaic_0001>
module attributes {stable_mosaic.version = 11 : i64} {
  func.func @_kernel_resident(%arg0: i32, %arg1: i32, %arg2: memref<1x4x256xf32, #tpu.memory_space<vmem>>, %arg3: memref<3x8x4xf32, #tpu.memory_space<vmem>>, %arg4: memref<8x1xf32, #tpu.memory_space<vmem>>, %arg5: memref<1x8x128xf32, #tpu.memory_space<vmem>>) attributes {dimension_semantics = [#tpu.dimension_semantics<parallel>, #tpu.dimension_semantics<arbitrary>], iteration_bounds = array<i64: 2, 1>, scalar_prefetch = 0 : i64, scratch_operands = 0 : i64, tpu.core_type = #tpu.core_type<tc>, window_params = [{transform_indices = @transform_0, window_bounds = array<i64: 1, 4, 256>}, {pipeline_mode = #tpu.pipeline_mode<synchronous>, transform_indices = @transform_1, window_bounds = array<i64: 3, 8, 4>}, {pipeline_mode = #tpu.pipeline_mode<synchronous>, transform_indices = @transform_2, window_bounds = array<i64: 8, 1>}, {transform_indices = @transform_3, window_bounds = array<i64: 1, 8, 128>}]} {
    %c128_i32 = arith.constant 128 : i32
    %0 = arith.muli %arg1, %c128_i32 : i32
    %1 = tpu.assume_multiple %0, 128 : i32
    %c0 = arith.constant 0 : index
    %c0_0 = arith.constant 0 : index
    %2 = arith.index_cast %1 : i32 to index
    %3 = vector.load %arg2[%c0, %c0_0, %2] : memref<1x4x256xf32, #tpu.memory_space<vmem>>, vector<1x4x256xf32>
    %4 = vector.shape_cast %3 : vector<1x4x256xf32> to vector<4x256xf32>
    %c0_1 = arith.constant 0 : index
    %c0_2 = arith.constant 0 : index
    %c0_3 = arith.constant 0 : index
    %5 = vector.load %arg3[%c0_1, %c0_2, %c0_3] : memref<3x8x4xf32, #tpu.memory_space<vmem>>, vector<1x8x4xf32>
    %6 = vector.shape_cast %5 : vector<1x8x4xf32> to vector<8x4xf32>
    %7 = vector.extract_strided_slice %4 {offsets = [0, 0], sizes = [4, 128], strides = [1, 1]} : vector<4x256xf32> to vector<4x128xf32>
    %cst = arith.constant dense<0.000000e+00> : vector<8x128xf32>
    %8 = tpu.matmul %6, %7, %cst {dimension_numbers = #tpu.dot_dimension_numbers<[1], [0], [0], [1], [0, 0, 1, 1], [], []>} : vector<8x4xf32>, vector<4x128xf32>, vector<8x128xf32> -> vector<8x128xf32>
    %c1 = arith.constant 1 : index
    %c0_4 = arith.constant 0 : index
    %c0_5 = arith.constant 0 : index
    %9 = vector.load %arg3[%c1, %c0_4, %c0_5] : memref<3x8x4xf32, #tpu.memory_space<vmem>>, vector<1x8x4xf32>
    %10 = vector.shape_cast %9 : vector<1x8x4xf32> to vector<8x4xf32>
    %11 = vector.extract_strided_slice %4 {offsets = [0, 1], sizes = [4, 128], strides = [1, 1]} : vector<4x256xf32> to vector<4x128xf32>
    %cst_6 = arith.constant dense<0.000000e+00> : vector<8x128xf32>
    %12 = tpu.matmul %10, %11, %cst_6 {dimension_numbers = #tpu.dot_dimension_numbers<[1], [0], [0], [1], [0, 0, 1, 1], [], []>} : vector<8x4xf32>, vector<4x128xf32>, vector<8x128xf32> -> vector<8x128xf32>
    %13 = arith.addf %8, %12 : vector<8x128xf32>
    %c2 = arith.constant 2 : index
    %c0_7 = arith.constant 0 : index
    %c0_8 = arith.constant 0 : index
    %14 = vector.load %arg3[%c2, %c0_7, %c0_8] : memref<3x8x4xf32, #tpu.memory_space<vmem>>, vector<1x8x4xf32>
    %15 = vector.shape_cast %14 : vector<1x8x4xf32> to vector<8x4xf32>
    %16 = vector.extract_strided_slice %4 {offsets = [0, 2], sizes = [4, 128], strides = [1, 1]} : vector<4x256xf32> to vector<4x128xf32>
    %cst_9 = arith.constant dense<0.000000e+00> : vector<8x128xf32>
    %17 = tpu.matmul %15, %16, %cst_9 {dimension_numbers = #tpu.dot_dimension_numbers<[1], [0], [0], [1], [0, 0, 1, 1], [], []>} : vector<8x4xf32>, vector<4x128xf32>, vector<8x128xf32> -> vector<8x128xf32>
    %18 = arith.addf %13, %17 : vector<8x128xf32>
    %c0_10 = arith.constant 0 : index
    %c0_11 = arith.constant 0 : index
    %19 = vector.load %arg4[%c0_10, %c0_11] : memref<8x1xf32, #tpu.memory_space<vmem>>, vector<8x1xf32>
    %20 = vector.broadcast %19 : vector<8x1xf32> to vector<8x128xf32>
    %21 = arith.addf %18, %20 : vector<8x128xf32>
    %c0_12 = arith.constant 0 : index
    %c0_13 = arith.constant 0 : index
    %c0_14 = arith.constant 0 : index
    %22 = vector.load %arg5[%c0_12, %c0_13, %c0_14] : memref<1x8x128xf32, #tpu.memory_space<vmem>>, vector<1x8x128xf32>
    %23 = vector.shape_cast %22 : vector<1x8x128xf32> to vector<8x128xf32>
    %24 = vector.shape_cast %21 : vector<8x128xf32> to vector<1x8x128xf32>
    tpu.vector_store %arg5[%c0_12, %c0_13, %c0_14], %24 {strides = array<i32>} : memref<1x8x128xf32, #tpu.memory_space<vmem>>, vector<1x8x128xf32>,
    return
  }
  func.func @transform_0(%arg0: i32, %arg1: i32) -> (i32, i32, i32) {
    %c0_i32 = arith.constant 0 : i32
    %c0_i32_0 = arith.constant 0 : i32
    %c0_i32_1 = arith.constant 0 : i32
    return %arg0, %c0_i32, %c0_i32_0 : i32, i32, i32
  }
  func.func @transform_1(%arg0: i32, %arg1: i32) -> (i32, i32, i32) {
    %c0_i32 = arith.constant 0 : i32
    %c0_i32_0 = arith.constant 0 : i32
    %c0_i32_1 = arith.constant 0 : i32
    %c0_i32_2 = arith.constant 0 : i32
    return %c0_i32, %c0_i32_0, %c0_i32_1 : i32, i32, i32
  }
  func.func @transform_2(%arg0: i32, %arg1: i32) -> (i32, i32) {
    %c0_i32 = arith.constant 0 : i32
    %c0_i32_0 = arith.constant 0 : i32
    %c0_i32_1 = arith.constant 0 : i32
    return %c0_i32, %c0_i32_0 : i32, i32
  }
  func.func @transform_3(%arg0: i32, %arg1: i32) -> (i32, i32, i32) {
    %c0_i32 = arith.constant 0 : i32
    %c0_i32_0 = arith.constant 0 : i32
    return %arg0, %c0_i32, %arg1 : i32, i32, i32
  }
}

</mosaic_0001>

<bundles_post_ra>
// kernel: weight_norm_conv1d.1
= control target key start
LH: loop header
LB: loop body
LE: loop exit
PB: predicated region body
PF: predicated region fallthrough
CT: control target
= control target key end

     0   :  { %8 = vsyncpa [#allocation3], 0  ;;  %s685_s0 = inlined_call_operand.vmem [shape: f32[2,4,256], index: 0, kind: input, shape index: {}]   ;;  %s686_s1 = inlined_call_operand.vmem [shape: f32[3,8,4], index: 1, kind: input, shape index: {}]   ;;  %s687_s2 = inlined_call_operand.vmem [shape: f32[8,1], index: 2, kind: input, shape index: {}]   ;;  %s688_s3 = inlined_call_operand.hbm [shape: f32[2,8,128], index: 3, kind: output, shape index: {}]  }
   0x1   :  { %10 = vsyncpa [#allocation3 + $0x1], 0  ;;  %s570_s12 = smov 0   ;;  %s572_s13 = smov 0  }
   0x2   :  { %s574_s14 = smov 0   ;;  %s576_s15 = smov 0  }
   0x3   :  { %s578_s16 = smov 0   ;;  %s580_s17 = smov 0  }
   0x4 LB: > { %s386_s18 = sadd.s32 4294967295, %s545_s17   ;;  %s387_s19 = sadd.s32 4294967294, %s545_s17   ;;  %s545_s17 = sphi %s580_s17, %s16_s17   ;;  %s541_s16 = sphi %s578_s16, %s695_s16   ;;  %s537_s15 = sphi %s576_s15, %s694_s15   ;;  %s533_s14 = sphi %s574_s14, %s693_s14   ;;  %s529_s13 = sphi %s572_s13, %s692_s13   ;;  %s525_s12 = sphi %s570_s12, %s691_s12  }
   0x5   : > { %s28_s20 = sadd.s32 1, %s541_s16  ;;  %s105_s21 = sadd.s32 1, %s533_s14 }
   0x6   : > { %p30_p0 = scmp.ge.s32.totalorder %s28_s20, 2  ;;  %p115_p1 = scmp.ne.s32.totalorder %s533_s14, %s529_s13 }
   0x7   : > { %p116_p2 = scmp.eq.s32.totalorder %s386_s18, 1  ;;  %p121_p3 = scmp.ne.s32.totalorder %s529_s13, %s525_s12 }
   0x8   : > { %s697_s20 = smov (%p30_p0, %s28_s20), 0  ;;  %p122_p5 = scmp.eq.s32.totalorder %s387_s19, 1 }
   0x9   : > { %p610_p4 = por %p116_p2, %p115_p1  ;;  %s100_s23 = ssub.s32 %s541_s16, %s697_s20 }
   0xa   : > { %p390_p6 = scmp.ge.s32.totalorder %s545_s17, 1  ;;  %p103_p7 = scmp.eq.s32.totalorder %s100_s23, 0 }
   0xb   : > { %p617_p8 = por %p122_p5, %p121_p3  ;;  %p154_p9 = scmp.lt.s32.totalorder %s545_s17, 3 }
   0xc   : > { %s623_s25 = scalar_select %p103_p7, %s533_s14, %s105_s21  }
   0xd   : > { %p155_p10 = pnand %p390_p6, %p154_p9 }
   0xe   : > { %p178_p11 = scmp.lt.s32.totalorder (!%p155_p10), %s537_s15, 1  ;;  %s547_s4 = smov (!%p155_p10), 127  }
   0xf   : > { %158 = sbr.rel (%p155_p10) target bundleno = 305 (0x131), region = 32  ;;  %s548_s5 = smov (!%p155_p10), 126  }
  0x10   : > { %s175_s21 = sand.u32 (!%p155_p10), 1, %s529_s13   ;;  %s487_s10 = scalar_lea.hbm (!%p155_p10), %s688_s3, 16 }
  0x11   : > { %s391_s23 = sshll.u32 (!%p155_p10), %s175_s21, 3  ;;  %s300_s6 = scalar_lea.sflag (!%p155_p10), [#allocation3], %s175_s21 }
  0x14   : > { %s179_s26 = scalar_select %p178_p11, %s537_s15, 1  ;;  %vm206_vm0 = vcmask 1043456   ;;  %vm202_vm1 = vcmask 31744   ;;  %v189_v5 = vld [vmem:[%s686_s1] sm:$0xff]  ;;  %v549_v7 = vmov 0   ;;  %vm200_vm2 = vcmask 1039360  }
  0x15   : > { %v291_v6 = vld [vmem:[%s687_s2] sm:$0xff]  ;;  %465 = vset.pattern.permute.xlu2 %v549_v7  ;;  %466 = vset.pattern.permute.xlu0 %v549_v7  ;;  %v394_v11 = vld [vmem:[%s686_s1 + $0x8] sm:$0xff]  ;;  %vm263_vm3 = vcmask 1031168   ;;  %v399_v14 = vld [vmem:[%s686_s1 + $0x10] sm:$0xff] }
  0x16   : > { %s406_s27 = sshll.u32 %s179_s26, 3  ;;  %294 = vperm.xlu2 %465, %v291_v6   ;;  %s403_s26 = sshll.u32 %s537_s15, 3 }
  0x17   : > { %s182_s30 = scalar_lea.vmem %s685_s0, %s406_s27  ;;  %s311_s29 = scalar_lea.hbm %s688_s3, %s403_s26 }
  0x18   : > { %v188_v0 = vld [vmem:[%s182_s30] sm:$0xff]  ;;  %s177_s30 = scalar_lea.vmem [#allocation2], %s391_s23 }
  0x19   : > { %193 = vst [vmem:[#allocation1] ss:$2 sm:$0xff] %v188_v0  ;;  %397 = vmatpush.msk.msra.mxu1 %vm206_vm0, %v188_v0 }
  0x1a   : > { %398 = vmatmul.msk.f32.vlgmr.msra.gmra.mxu1 %vm202_vm1, %v189_v5 }
  0x20   : > { %v194_v1 = vld.sshfl [vmem:[#allocation1] sm:$0xff pattern:$0x75316420]  ;;  %v195_v2 = vld.sshfl [vmem:[#allocation1 + $0x8] sm:$0xff pattern:$0x75316420] }
  0x21   : > { %196 = vrot.lane.b32.xlu1 %v194_v1, %s547_s4  ;;  %256 = vst [vmem:[#allocation1] ss:$2 sm:$0xff] %v188_v0 }
  0x28   : > { %v257_v3 = vld.sshfl [vmem:[#allocation1] sm:$0xff pattern:$0x75316420]  ;;  %v258_v4 = vld.sshfl [vmem:[#allocation1 + $0x8] sm:$0xff pattern:$0x75316420] }
  0x29   : > { %259 = vrot.lane.b32.xlu0 %v257_v3, %s548_s5  ;;  %198 = vrot.lane.b32.xlu1 %v195_v2, %s547_s4  ;;  %s313_s4 = sshll.u32 %s177_s30, 4  ;;  %s314_s4 = int_to_ptr.vmem [resolvable:$true] %s313_s4 }
  0x31   : > { %261 = vrot.lane.b32.xlu0 %v258_v4, %s548_s5  ;;  %s315_s5 = sshll.u32 %s311_s29, 4  ;;  %s316_s5 = int_to_ptr.hbm [resolvable:$true] %s315_s5 }
  0x32   : > { %s481_s7 = sshra.s32 %s316_s5, 4  ;;  %s482_s7 = int_to_ptr.hbm [resolvable:$true] %s481_s7 }
  0x33   : > { %s483_s15 = scalar_lea.hbm %s482_s7, 8  ;;  %p488_p1 = scmp.lt.s32.totalorder %s482_s7, %s688_s3 }
  0x34   : > { %p484_p12 = scmp.ne.s32.totalorder %s482_s7, %s483_s15  ;;  %p489_p2 = scmp.lt.s32.totalorder %s487_s10, %s483_s15 }
  0x36   : > { %p485_p13 = pnand %p484_p12, %p610_p4  ;;  %p490_p3 = por %p489_p2, %p488_p1 }
  0x38   : > { %p486_p0 = pneg %p485_p13 }
  0x3a   : > { %p491_p5 = pnand %p490_p3, %p486_p0 }
  0x70   : > { %v295_v20 = vpop.permute.xlu2 %294 }
  0x93   : > { %v197_v8 = vpop.permute.xlu1 %196 }
  0x97   : > { %v251_v17 = vpop.f32.mrf.mxu1 }
  0x9b   : > { %v260_v9 = vpop.permute.xlu0 %259  ;;  %v199_v10 = vpop.permute.xlu1 %198 }
  0x9c   : > { %v201_v12 = vsel %vm200_vm2, %v197_v8, %v199_v10 }
  0x9d   : > { %395 = vmatpush.msk.msra.mxu0 %vm206_vm0, %v201_v12 }
  0x9e   : > { %396 = vmatmul.msk.f32.vlgmr.msra.gmra.mxu0 %vm202_vm1, %v394_v11 }
  0xa3   : > { %v262_v13 = vpop.permute.xlu0 %261 }
  0xa4   : > { %v264_v15 = vsel %vm263_vm3, %v260_v9, %v262_v13 }
  0xa5   : > { %400 = vmatpush.msk.msra.mxu2 %vm206_vm0, %v264_v15 }
  0xa6   : > { %401 = vmatmul.msk.f32.vlgmr.msra.gmra.mxu2 %vm202_vm1, %v399_v14 }
 0x11b   : > { %v226_v16 = vpop.f32.mrf.mxu0 }
 0x11c   : > { %v252_v18 = vadd.f32 %v251_v17, %v226_v16 }
 0x129   : > { %v287_v19 = vpop.f32.mrf.mxu2 }
 0x12a   : > { %v290_v21 = vadd.f32 %v287_v19, %v252_v18 }
 0x12c   : > { %v297_v22 = vadd.f32 %v295_v20, %v290_v21 }
 0x12e   : > { %298 = vst [vmem:[%s177_s30] sm:$0xff] %v297_v22 }
 0x12f   : > { %494 = shalt.err (!%p491_p5)
}
 0x130   : > { %407 = dma.vmem_to_hbm [thread:$0]  (%p610_p4), %s314_s4, 128, %s316_s5, %s300_s6  }
 0x131 PF: > { %p413_p6 = scmp.ge.s32.totalorder %s545_s17, 2  ;;  %s327_s19 = sand.u32 1, %s525_s12  }
 0x132   : > { %s328_s21 = scalar_lea.sflag [#allocation3], %s327_s19 }
 0x133   : > { %p410_p7 = pnand %p413_p6, %p617_p8 }
 0x135   : > { %p411_p9 = pneg %p410_p7 }
 0x137   : > { %520 = dma.done.wait (%p411_p9), %s328_s21, 128  }
 0x138   : > { %522 = vsyncadd (%p411_p9), %s328_s21, 4294967168  ;;  %s16_s17 = sadd.s32 1, %s545_s17   ;;  %s691_s12 = smov %s529_s13 }
 0x139   : > { %p13_p10 = scmp.ge.s32.totalorder %s16_s17, 4   ;;  %s692_s13 = smov %s533_s14 }
 0x13a   : > { %s693_s14 = smov %s623_s25  ;;  %s694_s15 = smov %s541_s16 }
 0x13b   : > { %s695_s16 = smov %s697_s20  ;;  %15 = sbr.rel (!%p13_p10) target bundleno = 4 (0x4), region = 70 }
 0x140   :  { %334 = vsyncpa [#allocation3], 1 }
 0x141   :  { %336 = vsyncpa [#allocation3 + $0x1], 1 }

</bundles_post_ra>
